<compile_context>
chip_gen: v7x
topology: tpu7x:2x2x1
jax: 0.10.0
libtpu: 0.0.40
codegen_flags: <defaults>
</compile_context>

<pallas_src>
import functools

import jax
import jax.numpy as jnp
from jax.experimental import pallas as pl
from jax.experimental.pallas import tpu as pltpu

_LN_EPS = 1e-5
_VMEM_LIMIT = 48 * 1024 * 1024  # above 16/32 MiB scoped defaults, < v7x physical


def _prep_kernel(x_ref, gamma_ref, beta_ref, wcat_ref, bnode_ref,
                 m_ref, part_ref, *, feat):
    """Per row tile: LayerNorm -> ReLU -> fused [W_neigh|W_self] matmul.

    The feature axis is zero-padded to a lane-dense width FP; gamma/beta/W/b are
    zero-padded so padded columns remain exactly 0 through the whole pipeline.
    """
    x = x_ref[...]                                    # (TR, FP) f32, cols >= feat are 0
    fp = x.shape[-1]
    col = jax.lax.broadcasted_iota(jnp.int32, x.shape, 1)
    valid = col < feat
    inv_f = 1.0 / feat
    # LayerNorm statistics over the TRUE feature columns only.
    mean = jnp.sum(x, axis=-1, keepdims=True) * inv_f            # pads are zero
    centered = jnp.where(valid, x - mean, 0.0)
    var = jnp.sum(centered * centered, axis=-1, keepdims=True) * inv_f
    h = centered * jax.lax.rsqrt(var + _LN_EPS)
    h = h * gamma_ref[...] + beta_ref[...]            # padded cols -> 0 (gamma/beta padded w/ 0)
    h = jnp.maximum(h, 0.0)                           # ReLU
    # dropout(p=0.0) -> identity
    hb = h.astype(jnp.bfloat16)                       # bf16 MXU operands, f32 accumulation
    hw = jnp.dot(hb, wcat_ref[...], preferred_element_type=jnp.float32)   # (TR, 2*FP)
    m_ref[...] = hw[:, :fp].astype(jnp.bfloat16)      # neighbor messages  (h @ W_neigh)
    part_ref[...] = x + hw[:, fp:] + bnode_ref[...]   # residual + self term + bias


def _agg_kernel(a_ref, m_ref, part_ref, out_ref, acc_ref):
    """out = part + A @ m, K-tiled with an f32 VMEM accumulator."""
    k = pl.program_id(1)

    @pl.when(k == 0)
    def _():
        acc_ref[...] = jnp.zeros_like(acc_ref)

    acc_ref[...] += jnp.dot(a_ref[...], m_ref[...],
                            preferred_element_type=jnp.float32)

    @pl.when(k == pl.num_programs(1) - 1)
    def _():
        out_ref[...] = part_ref[...] + acc_ref[...]


def _edge_kernel(e_ref, we_ref, be_ref, out_ref):
    """edge_out_tile = e + e @ W_edge + b_edge   (the '+ e' is the res+ residual)."""
    e = e_ref[...]
    out_ref[...] = e + jnp.dot(e, we_ref[...],
                               preferred_element_type=jnp.float32) + be_ref[...]


def deep_gcn_layer_v2_res_plus(x, adj, edge_attr, params, *, tm=128, tk=128, te=256):
    """Pallas implementation of DeepGCNLayerV2(block='res+') forward."""
    N, F = x.shape
    E, De = edge_attr.shape

    tm = min(tm, N)
    tk = min(tk, N)
    te = min(te, E)
    assert N % tm == 0 and N % tk == 0 and E % te == 0, "driver expects divisible tiles"

    fp = max(128, pl.cdiv(F, 128) * 128)   # lane-dense feature width

    def pad_cols(a, width):
        return jnp.pad(a, ((0, 0), (0, width - a.shape[-1])))

    x_p = pad_cols(x.astype(jnp.float32), fp)
    gamma_p = pad_cols(params["gamma"], fp)
    beta_p = pad_cols(params["beta"], fp)
    bnode_p = pad_cols(params["b_node"], fp)

    # Fused weights [W_neigh | W_self], zero-padded, bf16 MXU operands.
    w_cat = jnp.zeros((fp, 2 * fp), jnp.float32)
    w_cat = w_cat.at[:F, :F].set(params["w_neigh"])
    w_cat = w_cat.at[:F, fp:fp + F].set(params["w_self"])
    w_cat = w_cat.astype(jnp.bfloat16)

    # Dense adjacency stream in bf16 (0/1/small counts are exact); halves the
    # bytes of the dominant HBM stream and the VMEM footprint of its tiles.
    adj_b = adj.astype(jnp.bfloat16)

    def cparams(sem):
        return pltpu.CompilerParams(dimension_semantics=sem,
                                    vmem_limit_bytes=_VMEM_LIMIT)

    # ---- Pass 1: row-tiled LayerNorm + ReLU + fused weight matmul -------------
    m_bf16, part = pl.pallas_call(
        functools.partial(_prep_kernel, feat=F),
        out_shape=(jax.ShapeDtypeStruct((N, fp), jnp.bfloat16),
                   jax.ShapeDtypeStruct((N, fp), jnp.float32)),
        grid=(N // tm,),
        in_specs=[
            pl.BlockSpec((tm, fp), lambda i: (i, 0)),        # x (padded)
            pl.BlockSpec((1, fp), lambda i: (0, 0)),         # gamma
            pl.BlockSpec((1, fp), lambda i: (0, 0)),         # beta
            pl.BlockSpec((fp, 2 * fp), lambda i: (0, 0)),    # [W_neigh | W_self]
            pl.BlockSpec((1, fp), lambda i: (0, 0)),         # b_node
        ],
        out_specs=(pl.BlockSpec((tm, fp), lambda i: (i, 0)),
                   pl.BlockSpec((tm, fp), lambda i: (i, 0))),
        compiler_params=cparams(("parallel",)),
    )(x_p, gamma_p, beta_p, w_cat, bnode_p)

    # ---- Pass 2: tiled dense aggregation  out = part + A @ m ------------------
    node_out_p = pl.pallas_call(
        _agg_kernel,
        out_shape=jax.ShapeDtypeStruct((N, fp), jnp.float32),
        grid_spec=pltpu.PrefetchScalarGridSpec(
            num_scalar_prefetch=0,
            grid=(N // tm, N // tk),
            in_specs=[
                pl.BlockSpec((tm, tk), lambda i, k: (i, k)),   # adjacency tile
                pl.BlockSpec((tk, fp), lambda i, k: (k, 0)),   # message tile
                pl.BlockSpec((tm, fp), lambda i, k: (i, 0)),   # part (resident over k)
            ],
            out_specs=pl.BlockSpec((tm, fp), lambda i, k: (i, 0)),
            scratch_shapes=[pltpu.VMEM((tm, fp), jnp.float32)],
        ),
        compiler_params=cparams(("parallel", "arbitrary")),
    )(adj_b, m_bf16, part)

    node_out = node_out_p[:, :F]   # drop the lane padding

    # ---- Edge path: tiled over E ----------------------------------------------
    edge_out = pl.pallas_call(
        _edge_kernel,
        out_shape=jax.ShapeDtypeStruct((E, De), jnp.float32),
        grid=(E // te,),
        in_specs=[
            pl.BlockSpec((te, De), lambda i: (i, 0)),          # edge_attr tile
            pl.BlockSpec((De, De), lambda i: (0, 0)),          # W_edge (resident)
            pl.BlockSpec((1, De), lambda i: (0, 0)),           # b_edge (resident)
        ],
        out_specs=pl.BlockSpec((te, De), lambda i: (i, 0)),
        compiler_params=cparams(("parallel",)),
    )(edge_attr, params["w_edge"], params["b_edge"])

    return node_out, edge_out


def _reference(x, adj, edge_attr, params):
    mean = jnp.mean(x, axis=-1, keepdims=True)
    var = jnp.mean((x - mean) ** 2, axis=-1, keepdims=True)
    h = (x - mean) / jnp.sqrt(var + _LN_EPS)
    h = h * params["gamma"] + params["beta"]
    h = jnp.maximum(h, 0.0)
    node = adj @ (h @ params["w_neigh"]) + h @ params["w_self"] + params["b_node"]
    edge = edge_attr @ params["w_edge"] + params["b_edge"]
    return x + node, edge_attr + edge


if __name__ == "__main__":
    key = jax.random.PRNGKey(0)
    N, F = 256, 32     # nodes, node feature dim  (exercises grid=(2,2) tiling)
    E, De = 512, 16    # edges, edge feature dim

    ks = jax.random.split(key, 8)
    x = jax.random.normal(ks[0], (N, F), dtype=jnp.float32)
    edge_attr = jax.random.normal(ks[1], (E, De), dtype=jnp.float32)

    # Deterministic random graph -> dense adjacency (plain-JAX glue).
    src = jax.random.randint(ks[2], (E,), 0, N)
    dst = jax.random.randint(ks[3], (E,), 0, N)
    adj = jnp.zeros((N, N), dtype=jnp.float32).at[dst, src].add(1.0)

    scale = 1.0 / jnp.sqrt(jnp.float32(F))
    params = {
        "gamma": jnp.ones((1, F), dtype=jnp.float32),
        "beta": jnp.zeros((1, F), dtype=jnp.float32),
        "w_neigh": jax.random.normal(ks[4], (F, F), dtype=jnp.float32) * scale,
        "w_self": jax.random.normal(ks[5], (F, F), dtype=jnp.float32) * scale,
        "b_node": jnp.zeros((1, F), dtype=jnp.float32),
        "w_edge": jax.random.normal(ks[6], (De, De), dtype=jnp.float32)
                  * (1.0 / jnp.sqrt(jnp.float32(De))),
        "b_edge": jnp.zeros((1, De), dtype=jnp.float32),
    }

    node_out, edge_out = deep_gcn_layer_v2_res_plus(x, adj, edge_attr, params)
    jax.block_until_ready((node_out, edge_out))

    ref_node, ref_edge = _reference(x, adj, edge_attr, params)
    # Node path uses bf16 MXU operands (adjacency + activations) with f32
    # accumulation -> looser tolerance than a pure-f32 comparison.
    assert jnp.allclose(node_out, ref_node, atol=1e-1, rtol=5e-2), \
        float(jnp.max(jnp.abs(node_out - ref_node)))
    assert jnp.allclose(edge_out, ref_edge, atol=1e-4, rtol=1e-4), \
        float(jnp.max(jnp.abs(edge_out - ref_edge)))

    print("KERNEL_OK")
</pallas_src>

<mosaic_0001>
module attributes {stable_mosaic.version = 11 : i64} {
  func.func @_prep_kernel(%arg0: i32, %arg1: memref<128x128xf32, #tpu.memory_space<vmem>>, %arg2: memref<1x128xf32, #tpu.memory_space<vmem>>, %arg3: memref<1x128xf32, #tpu.memory_space<vmem>>, %arg4: memref<128x256xbf16, #tpu.memory_space<vmem>>, %arg5: memref<1x128xf32, #tpu.memory_space<vmem>>, %arg6: memref<128x128xbf16, #tpu.memory_space<vmem>>, %arg7: memref<128x128xf32, #tpu.memory_space<vmem>>) attributes {dimension_semantics = [#tpu.dimension_semantics<parallel>], iteration_bounds = array<i64: 2>, scalar_prefetch = 0 : i64, scratch_operands = 0 : i64, tpu.core_type = #tpu.core_type<tc>, window_params = [{transform_indices = @transform_0, window_bounds = array<i64: 128, 128>}, {pipeline_mode = #tpu.pipeline_mode<synchronous>, transform_indices = @transform_1, window_bounds = array<i64: 1, 128>}, {pipeline_mode = #tpu.pipeline_mode<synchronous>, transform_indices = @transform_2, window_bounds = array<i64: 1, 128>}, {pipeline_mode = #tpu.pipeline_mode<synchronous>, transform_indices = @transform_3, window_bounds = array<i64: 128, 256>}, {pipeline_mode = #tpu.pipeline_mode<synchronous>, transform_indices = @transform_4, window_bounds = array<i64: 1, 128>}, {transform_indices = @transform_5, window_bounds = array<i64: 128, 128>}, {transform_indices = @transform_6, window_bounds = array<i64: 128, 128>}]} {
    %c0 = arith.constant 0 : index
    %c0_0 = arith.constant 0 : index
    %0 = vector.load %arg1[%c0, %c0_0] : memref<128x128xf32, #tpu.memory_space<vmem>>, vector<128x128xf32>
    %1 = tpu.iota {dimensions = array<i32: 1>} : vector<128x128xi32>
    %c32_i32 = arith.constant 32 : i32
    %2 = vector.broadcast %c32_i32 : i32 to vector<128x128xi32>
    %3 = arith.cmpi slt, %1, %2 : vector<128x128xi32>
    %cst = arith.constant dense<0.000000e+00> : vector<128xf32>
    %4 = vector.multi_reduction <add>, %0, %cst [1] : vector<128x128xf32> to vector<128xf32>
    %5 = vector.shape_cast %4 : vector<128xf32> to vector<128x1xf32>
    %cst_1 = arith.constant 3.125000e-02 : f32
    %6 = vector.broadcast %cst_1 : f32 to vector<128x1xf32>
    %7 = arith.mulf %5, %6 : vector<128x1xf32>
    %8 = vector.broadcast %7 : vector<128x1xf32> to vector<128x128xf32>
    %9 = arith.subf %0, %8 : vector<128x128xf32>
    %cst_2 = arith.constant 0.000000e+00 : f32
    %10 = vector.broadcast %cst_2 : f32 to vector<128x128xf32>
    %11 = arith.select %3, %9, %10 : vector<128x128xi1>, vector<128x128xf32>
    %12 = arith.mulf %11, %11 : vector<128x128xf32>
    %cst_3 = arith.constant dense<0.000000e+00> : vector<128xf32>
    %13 = vector.multi_reduction <add>, %12, %cst_3 [1] : vector<128x128xf32> to vector<128xf32>
    %14 = vector.shape_cast %13 : vector<128xf32> to vector<128x1xf32>
    %cst_4 = arith.constant 3.125000e-02 : f32
    %15 = vector.broadcast %cst_4 : f32 to vector<128x1xf32>
    %16 = arith.mulf %14, %15 : vector<128x1xf32>
    %cst_5 = arith.constant 9.99999974E-6 : f32
    %17 = vector.broadcast %cst_5 : f32 to vector<128x1xf32>
    %18 = arith.addf %16, %17 : vector<128x1xf32>
    %19 = math.rsqrt %18 : vector<128x1xf32>
    %20 = vector.broadcast %19 : vector<128x1xf32> to vector<128x128xf32>
    %21 = arith.mulf %11, %20 : vector<128x128xf32>
    %c0_6 = arith.constant 0 : index
    %c0_7 = arith.constant 0 : index
    %22 = vector.load %arg2[%c0_6, %c0_7] : memref<1x128xf32, #tpu.memory_space<vmem>>, vector<1x128xf32>
    %23 = vector.broadcast %22 : vector<1x128xf32> to vector<128x128xf32>
    %24 = arith.mulf %21, %23 : vector<128x128xf32>
    %c0_8 = arith.constant 0 : index
    %c0_9 = arith.constant 0 : index
    %25 = vector.load %arg3[%c0_8, %c0_9] : memref<1x128xf32, #tpu.memory_space<vmem>>, vector<1x128xf32>
    %26 = vector.broadcast %25 : vector<1x128xf32> to vector<128x128xf32>
    %27 = arith.addf %24, %26 : vector<128x128xf32>
    %cst_10 = arith.constant 0.000000e+00 : f32
    %28 = vector.broadcast %cst_10 : f32 to vector<128x128xf32>
    %29 = arith.maximumf %27, %28 : vector<128x128xf32>
    %30 = arith.truncf %29 : vector<128x128xf32> to vector<128x128xbf16>
    %c0_11 = arith.constant 0 : index
    %c0_12 = arith.constant 0 : index
    %31 = vector.load %arg4[%c0_11, %c0_12] : memref<128x256xbf16, #tpu.memory_space<vmem>>, vector<128x256xbf16>
    %cst_13 = arith.constant dense<0.000000e+00> : vector<128x256xf32>
    %32 = tpu.matmul %30, %31, %cst_13 {dimension_numbers = #tpu.dot_dimension_numbers<[1], [0], [0], [1], [0, 0, 1, 1], [], []>} : vector<128x128xbf16>, vector<128x256xbf16>, vector<128x256xf32> -> vector<128x256xf32>
    %33 = vector.extract_strided_slice %32 {offsets = [0, 0], sizes = [128, 128], strides = [1, 1]} : vector<128x256xf32> to vector<128x128xf32>
    %34 = arith.truncf %33 : vector<128x128xf32> to vector<128x128xbf16>
    %c0_14 = arith.constant 0 : index
    %c0_15 = arith.constant 0 : index
    %35 = vector.load %arg6[%c0_14, %c0_15] : memref<128x128xbf16, #tpu.memory_space<vmem>>, vector<128x128xbf16>
    tpu.vector_store %arg6[%c0_14, %c0_15], %34 {strides = array<i32>} : memref<128x128xbf16, #tpu.memory_space<vmem>>, vector<128x128xbf16>,
    %36 = vector.extract_strided_slice %32 {offsets = [0, 128], sizes = [128, 128], strides = [1, 1]} : vector<128x256xf32> to vector<128x128xf32>
    %37 = arith.addf %0, %36 : vector<128x128xf32>
    %c0_16 = arith.constant 0 : index
    %c0_17 = arith.constant 0 : index
    %38 = vector.load %arg5[%c0_16, %c0_17] : memref<1x128xf32, #tpu.memory_space<vmem>>, vector<1x128xf32>
    %39 = vector.broadcast %38 : vector<1x128xf32> to vector<128x128xf32>
    %40 = arith.addf %37, %39 : vector<128x128xf32>
    %c0_18 = arith.constant 0 : index
    %c0_19 = arith.constant 0 : index
    %41 = vector.load %arg7[%c0_18, %c0_19] : memref<128x128xf32, #tpu.memory_space<vmem>>, vector<128x128xf32>
    tpu.vector_store %arg7[%c0_18, %c0_19], %40 {strides = array<i32>} : memref<128x128xf32, #tpu.memory_space<vmem>>, vector<128x128xf32>,
    return
  }
  func.func @transform_0(%arg0: i32) -> (i32, i32) {
    %c0_i32 = arith.constant 0 : i32
    %c0_i32_0 = arith.constant 0 : i32
    return %arg0, %c0_i32 : i32, i32
  }
  func.func @transform_1(%arg0: i32) -> (i32, i32) {
    %c0_i32 = arith.constant 0 : i32
    %c0_i32_0 = arith.constant 0 : i32
    %c0_i32_1 = arith.constant 0 : i32
    return %c0_i32, %c0_i32_0 : i32, i32
  }
  func.func @transform_2(%arg0: i32) -> (i32, i32) {
    %c0_i32 = arith.constant 0 : i32
    %c0_i32_0 = arith.constant 0 : i32
    %c0_i32_1 = arith.constant 0 : i32
    return %c0_i32, %c0_i32_0 : i32, i32
  }
  func.func @transform_3(%arg0: i32) -> (i32, i32) {
    %c0_i32 = arith.constant 0 : i32
    %c0_i32_0 = arith.constant 0 : i32
    %c0_i32_1 = arith.constant 0 : i32
    return %c0_i32, %c0_i32_0 : i32, i32
  }
  func.func @transform_4(%arg0: i32) -> (i32, i32) {
    %c0_i32 = arith.constant 0 : i32
    %c0_i32_0 = arith.constant 0 : i32
    %c0_i32_1 = arith.constant 0 : i32
    return %c0_i32, %c0_i32_0 : i32, i32
  }
  func.func @transform_5(%arg0: i32) -> (i32, i32) {
    %c0_i32 = arith.constant 0 : i32
    %c0_i32_0 = arith.constant 0 : i32
    return %arg0, %c0_i32 : i32, i32
  }
  func.func @transform_6(%arg0: i32) -> (i32, i32) {
    %c0_i32 = arith.constant 0 : i32
    %c0_i32_0 = arith.constant 0 : i32
    return %arg0, %c0_i32 : i32, i32
  }
}

</mosaic_0001>

<bundles_post_ra>
// kernel: tpu_custom_call.1
= control target key start
LH: loop header
LB: loop body
LE: loop exit
PB: predicated region body
PF: predicated region fallthrough
CT: control target
= control target key end

     0   :  { %12 = vsyncpa [#allocation3], 0  ;;  %s2103_s0 = inlined_call_operand.hbm [shape: f32[256,128], index: 0, kind: input, shape index: {}]   ;;  %s2104_s1 = inlined_call_operand.vmem [shape: f32[1,128], index: 1, kind: input, shape index: {}]   ;;  %s2105_s2 = inlined_call_operand.vmem [shape: f32[1,128], index: 2, kind: input, shape index: {}]   ;;  %s2106_s3 = inlined_call_operand.hbm [shape: bf16[128,256], index: 3, kind: input, shape index: {}]   ;;  %s2107_s4 = inlined_call_operand.vmem [shape: f32[1,128], index: 4, kind: input, shape index: {}]   ;;  %s2108_s5 = inlined_call_operand.hbm [shape: bf16[256,128], index: 5, kind: output, shape index: {0}]   ;;  %s2109_s6 = inlined_call_operand.hbm [shape: f32[256,128], index: 6, kind: output, shape index: {1}]  }
   0x1   :  { %14 = vsyncpa [#allocation3 + $0x1], 0 }
   0x2   :  { %15 = vsyncpa [#allocation6], 0 }
   0x3   :  { %16 = vsyncpa [#allocation4], 0 }
   0x4   :  { %18 = vsyncpa [#allocation4 + $0x1], 0 }
   0x5   :  { %19 = vsyncpa [#allocation9], 0 }
   0x6   :  { %21 = vsyncpa [#allocation9 + $0x1], 0  ;;  %s1545_s21 = smov 0   ;;  %s1547_s22 = smov 0  }
   0x7   :  { %s1549_s23 = smov 0   ;;  %s1551_s24 = smov 0  }
   0x8 LB: > { %s1566_s25 = sadd.s32 4294967295, %s1497_s24   ;;  %s1075_s26 = sadd.s32 4294967294, %s1497_s24   ;;  %s1497_s24 = sphi %s1551_s24, %s2129_s24   ;;  %s1493_s23 = sphi %s1549_s23, %s2128_s23   ;;  %s1489_s22 = sphi %s1547_s22, %s2127_s22   ;;  %s1485_s21 = sphi %s1545_s21, %s2126_s21  }
   0x9   : > { %p47_p0 = scmp.ne.s32.totalorder %s1489_s22, %s1485_s21  ;;  %p2110_p1 = scmp.eq.s32.totalorder %s1566_s25, 0 }
   0xa   : > { %p161_p3 = scmp.eq.s32.totalorder %s1075_s26, 1  ;;  %p1076_p5 = scmp.ge.s32.totalorder %s1497_s24, 1 }
   0xb   : > { %p1575_p4 = por %p2110_p1, %p47_p0  ;;  %p194_p7 = scmp.lt.s32.totalorder %s1497_s24, 3 }
   0xc   : > { %p1580_p6 = por %p161_p3, %p47_p0  ;;  %s1499_s30 = smov [#allocation5]  }
   0xd   : > { %s2113_s27 = scalar_select %p1575_p4, 1, 0 }
   0xe   : > { %s2114_s28 = scalar_select %p1580_p6, 1, 0 }
   0xf   : > { %p1585_p8 = pnand %p1076_p5, %p194_p7  ;;  %s212_s7 = sshll.u32 %s1499_s30, 4  ;;  %s1589_s7 = int_to_ptr.vmem [resolvable:$true] %s212_s7 }
  0x10   : > { %s1601_s9 = sadd.s32 1, %s1497_s24   ;;  %s34_s10 = sadd.s32 1, %s1493_s23 }
  0x11   : > { %s2115_s29 = scalar_select %p1585_p8, 1, 0 }
  0x12   : > { %p1222_p9 = pneg %p1585_p8  ;;  %s31_s11 = ssub.s32 %s1497_s24, %s1601_s9 }
  0x13   : > { %s1337_s14 = scalar_lea.hbm %s2106_s3, 2048 }
  0x14   : > { %p1596_p11 = pnand %p1222_p9, %p2110_p1  ;;  %p1338_p12 = scmp.ne.s32.totalorder %s2106_s3, %s1337_s14 }
  0x15   : > { %p1344_p5 = scmp.lt.u32.totalorder %s1337_s14, %s2106_s3 }
  0x16   : > { %p1339_p13 = pneg %p1596_p11 }
  0x18   : > { %p1340_p0 = pnand %p1339_p13, %p1338_p12 }
  0x1a   : > { %p1341_p3 = pneg %p1340_p0 }
  0x1c   : > { %p1346_p7 = pnand %p1344_p5, %p1341_p3 }
  0x1e   : > { %1349 = shalt.err (!%p1346_p7)
}
  0x1f   : > { %s1350_s19 = scalar_lea.vmem %s1589_s7, 2048  ;;  %p1358_p2 = scmp.lt.s32.totalorder %s1589_s7, %s1589_s7 }
  0x20   : > { %p1351_p9 = scmp.ne.s32.totalorder %s1589_s7, %s1350_s19  ;;  %p1359_p6 = scmp.lt.s32.totalorder %s1350_s19, %s1350_s19 }
  0x22   : > { %p1353_p10 = pnand %p1351_p9, %p1339_p13  ;;  %p1360_p4 = por %p1359_p6, %p1358_p2 }
  0x24   : > { %p1354_p1 = pneg %p1353_p10 }
  0x26   : > { %p1361_p8 = pnand %p1360_p4, %p1354_p1 }
  0x28   : > { %1364 = shalt.err (!%p1361_p8)
}
  0x29   : > { %s1500_s20 = smov 128   ;;  %s1501_s26 = smov 8  }
  0x2a   : > { %1225 = dma.hbm_to_vmem [thread:$0]  (!%p1596_p11), %s2106_s3, 2048, %s1589_s7, [#allocation6], %s1500_s20, %s1500_s20, %s1501_s26  }
  0x2b   : > { %p32_p1 = scmp.eq.s32.totalorder %s31_s11, 0  ;;  %p41_p2 = scmp.ne.s32.totalorder %s1493_s23, %s1489_s22 }
  0x2c   : > { %p42_p4 = scmp.eq.s32.totalorder %s1497_s24, 0  ;;  %p1238_p6 = scmp.lt.s32.totalorder %s1497_s24, 2 }
  0x2d   : > { %s1635_s13 = scalar_select %p32_p1, %s1493_s23, %s34_s10  }
  0x2e   : > { %p43_p8 = por %p42_p4, %p41_p2  ;;  %p2117_p10 = scmp.eq.s32.totalorder %s1566_s25, 1 }
  0x2f   : > { %s229_s8 = sand.u32 1, %s1493_s23   ;;  %s1130_s15 = sshll.u32 %s1497_s24, 11 }
  0x30   : > { %p1639_p12 = por %p2117_p10, %p41_p2  ;;  %s1079_s16 = sshll.u32 %s229_s8, 7 }
  0x31   : > { %s1648_s19 = scalar_lea.hbm %s2103_s0, %s1130_s15  ;;  %s233_s7 = scalar_lea.vmem [#allocation2], %s1079_s16 }
  0x32   : > { %s240_s10 = sshll.u32 %s233_s7, 4  ;;  %p1650_p11 = pnand %p1238_p6, %p43_p8  ;;  %s1654_s10 = int_to_ptr.vmem [resolvable:$true] %s240_s10 }
  0x33   : > { %s1656_s30 = scalar_lea.sflag [#allocation3], %s229_s8  ;;  %s1365_s12 = scalar_lea.hbm %s1648_s19, 2048 }
  0x34   : > { %p1366_p13 = scmp.ne.s32.totalorder %s1648_s19, %s1365_s12  ;;  %p1367_p0 = pneg %p1650_p11 }
  0x35   : > { %s1370_s17 = scalar_lea.hbm %s2103_s0, 4096  ;;  %p1371_p7 = scmp.lt.u32.totalorder %s1648_s19, %s2103_s0 }
  0x36   : > { %p1368_p3 = pnand %p1367_p0, %p1366_p13  ;;  %p1372_p9 = scmp.lt.u32.totalorder %s1370_s17, %s1365_s12 }
  0x37   : > { %p1374_p2 = scmp.lt.u32.totalorder %s1365_s12, %s1648_s19 }
  0x38   : > { %p1369_p5 = pneg %p1368_p3  ;;  %p1373_p1 = por %p1372_p9, %p1371_p7 }
  0x3a   : > { %p1375_p4 = por %p1374_p2, %p1373_p1 }
  0x3c   : > { %p1376_p6 = pnand %p1375_p4, %p1369_p5 }
  0x3e   : > { %1379 = shalt.err (!%p1376_p6)
}
  0x3f   : > { %s1380_s8 = scalar_lea.vmem %s1654_s10, 2048  ;;  %s1502_s15 = smov [#allocation2]  }
  0x40   : > { %p1381_p8 = scmp.ne.s32.totalorder %s1654_s10, %s1380_s8  ;;  %s1385_s16 = sshll.u32 %s1502_s15, 4  ;;  %s1386_s16 = int_to_ptr.vmem [resolvable:$false] %s1385_s16 }
  0x41   : > { %s1387_s18 = scalar_lea.vmem %s1386_s16, 4096  ;;  %p1388_p3 = scmp.lt.s32.totalorder %s1654_s10, %s1386_s16 }
  0x42   : > { %p1383_p10 = pnand %p1381_p8, %p1367_p0  ;;  %p1389_p7 = scmp.lt.s32.totalorder %s1387_s18, %s1380_s8 }
  0x44   : > { %p1384_p13 = pneg %p1383_p10  ;;  %p1390_p9 = por %p1389_p7, %p1388_p3 }
  0x46   : > { %p1391_p1 = pnand %p1390_p9, %p1384_p13 }
  0x48   : > { %1394 = shalt.err (!%p1391_p1)
}
  0x49   : > { %1229 = dma.hbm_to_vmem [thread:$0]  (!%p1650_p11), %s1648_s19, 2048, %s1654_s10, %s1656_s30, %s1500_s20, %s1500_s20, %s1501_s26  }
  0x4a   : > { %p2120_p0 = scmp.ne.s32.totalorder %s2115_s29, 0 }
  0x4b   : > { %s1690_s12 = sand.u32 (!%p2120_p0), 1, %s1489_s22   ;;  %p2121_p5 = scmp.ne.s32.totalorder (!%p2120_p0), %s2113_s27, 0 }
  0x4c   : > { %252 = sbr.rel (%p2120_p0) target bundleno = 692 (0x2b4), region = 40  ;;  %s1083_s17 = sshll.u32 (!%p2120_p0), %s1690_s12, 7 }
  0x4d   : > { %s255_s7 = scalar_lea.sflag (!%p2120_p0), [#allocation3], %s1690_s12  ;;  %s1696_s11 = scalar_lea.vmem (!%p2120_p0), [#allocation2], %s1083_s17 }
  0x53   : > { %1468 = dma.done.wait (%p2121_p5), %s255_s7, 2048  }
  0x54   : > { %1470 = vsyncadd (%p2121_p5), %s255_s7, 4294965248  ;;  %p2122_p11 = scmp.eq.s32.totalorder %s1566_s25, 0 }
  0x56   : > { %1472 = dma.done.wait (%p2122_p11), [#allocation6], 2048   ;;  %p2123_p2 = pmov %p2122_p11 }
  0x57   : > { %v1707_v0 = vld [vmem:[%s1696_s11] sm:$0xff]  ;;  %v1715_v2 = vld [vmem:[%s1696_s11 + $0x8] sm:$0xff]  ;;  %v1721_v4 = vld [vmem:[%s1696_s11 + $0x10] sm:$0xff]  ;;  %v316_v18 = vlaneseq  ;;  %s1085_s19 = sshll.u32 %s1690_s12, 6  ;;  %s1965_s15 = scalar_lea.vmem [#allocation8], %s1083_s17 }
  0x58   : > { %1474 = vsyncadd (%p2123_p2), [#allocation6], 4294965248  ;;  %v1710_v1 = vld [vmem:[%s1696_s11 + $0x40] sm:$0xff]  ;;  %319 = vadd.xlane.f32.xlu0 %v1707_v0  ;;  %v1718_v3 = vld [vmem:[%s1696_s11 + $0x48] sm:$0xff]  ;;  %s1960_s8 = scalar_lea.vmem [#allocation7], %s1085_s19  ;;  %s1147_s18 = sshll.u32 %s1566_s25, 10 }
  0x59   : > { %335 = vadd.xlane.f32.xlu1 %v1710_v1  ;;  %v1726_v5 = vld [vmem:[%s1696_s11 + $0x18] sm:$0xff]  ;;  %v1729_v6 = vld [vmem:[%s1696_s11 + $0x50] sm:$0xff]  ;;  %v1739_v8 = vld [vmem:[%s1696_s11 + $0x20] sm:$0xff]  ;;  %v1770_v19 = vand.u32 127, %v316_v18  ;;  %s944_s16 = sshll.u32 %s1960_s8, 4  ;;  %s1148_s17 = sshll.u32 %s1566_s25, 11  ;;  %s2007_s16 = int_to_ptr.vmem [resolvable:$true] %s944_s16 }
  0x5a   : > { %v1734_v7 = vld [vmem:[%s1696_s11 + $0x58] sm:$0xff]  ;;  %v1742_v9 = vld [vmem:[%s1696_s11 + $0x28] sm:$0xff]  ;;  %v1747_v10 = vld [vmem:[%s1696_s11 + $0x60] sm:$0xff]  ;;  %s960_s7 = sshll.u32 %s1965_s15, 4  ;;  %s2021_s29 = scalar_lea.hbm %s2108_s5, %s1147_s18  ;;  %s2031_s7 = int_to_ptr.vmem [resolvable:$true] %s960_s7 }
  0x5b   : > { %v1750_v11 = vld [vmem:[%s1696_s11 + $0x68] sm:$0xff]  ;;  %v1755_v12 = vld [vmem:[%s1696_s11 + $0x30] sm:$0xff]  ;;  %v1758_v13 = vld [vmem:[%s1696_s11 + $0x38] sm:$0xff]  ;;  %vm318_vm0 = vcmp.lt.s32.totalorder %v1770_v19, 32  ;;  %s2029_s26 = scalar_lea.hbm %s2109_s6, %s1148_s17  ;;  %s926_s19 = scalar_lea.sflag [#allocation4], %s1690_s12 }
  0x5c   : > { %321 = vadd.xlane.f32.xlu0 %v1715_v2  ;;  %v1763_v14 = vld [vmem:[%s1696_s11 + $0x70] sm:$0xff]  ;;  %v1766_v15 = vld [vmem:[%s1696_s11 + $0x78] sm:$0xff]  ;;  %v1281_v16 = vld [vmem:[#allocation5 + $0x4] ss:$8 sps:$4 sm:$0xff]   ;;  %s1395_s10 = scalar_lea.vmem %s2007_s16, 1024  ;;  %s1504_s30 = smov [#allocation7]  }
  0x5d   : > { %337 = vadd.xlane.f32.xlu1 %v1718_v3  ;;  %v1283_v17 = vld [vmem:[#allocation5] ss:$8 sps:$4 sm:$0xff]   ;;  %677 = vmatprep.subr.bf16.mxu0 %v1281_v16  ;;  %v1296_v19 = vld [vmem:[#allocation5 + $0x54] ss:$8 sps:$4 sm:$0xff]   ;;  %p1396_p4 = scmp.ne.s32.totalorder %s2007_s16, %s1395_s10  ;;  %s1399_s18 = sshll.u32 %s1504_s30, 4  ;;  %s1400_s18 = int_to_ptr.vmem [resolvable:$false] %s1399_s18 }
  0x5e   : > { %1196 = vmatprep.subr.bf16.mxu1 %v1281_v16  ;;  %678 = vmatpush1.bf16.msra.mxu0 %v1283_v17  ;;  %s1401_s11 = scalar_lea.vmem %s1400_s18, 2048  ;;  %p1402_p10 = scmp.lt.s32.totalorder %s2007_s16, %s1400_s18 }
  0x5f   : > { %1204 = vmatpush1.bf16.msra.mxu1 %v1283_v17  ;;  %p1397_p6 = pnand %p1396_p4, %p1639_p12  ;;  %p1403_p13 = scmp.lt.s32.totalorder %s1401_s11, %s1395_s10 }
  0x60   : > { %323 = vadd.xlane.f32.xlu0 %v1721_v4 }
  0x61   : > { %325 = vadd.xlane.f32.xlu1 %v1726_v5  ;;  %p1398_p8 = pneg %p1397_p6  ;;  %p1404_p3 = por %p1403_p13, %p1402_p10 }
  0x63   : > { %p1405_p7 = pnand %p1404_p3, %p1398_p8 }
  0x64   : > { %339 = vadd.xlane.f32.xlu0 %v1729_v6 }
  0x65   : > { %341 = vadd.xlane.f32.xlu1 %v1734_v7 }
  0x68   : > { %327 = vadd.xlane.f32.xlu0 %v1739_v8 }
  0x69   : > { %329 = vadd.xlane.f32.xlu1 %v1742_v9 }
  0x6c   : > { %343 = vadd.xlane.f32.xlu0 %v1747_v10 }
  0x6d   : > { %345 = vadd.xlane.f32.xlu1 %v1750_v11 }
  0x70   : > { %331 = vadd.xlane.f32.xlu0 %v1755_v12 }
  0x71   : > { %333 = vadd.xlane.f32.xlu1 %v1758_v13 }
  0x74   : > { %347 = vadd.xlane.f32.xlu0 %v1763_v14 }
  0x75   : > { %349 = vadd.xlane.f32.xlu1 %v1766_v15 }
  0xe5   : > { %v320_v20 = vpop.xlane.xlu0 %319 }
  0xe6   : > { %v336_v21 = vpop.xlane.xlu1 %335  ;;  %v351_v22 = vmul.f32 0.03125, %v320_v20 }
  0xe7   : > { %v359_v23 = vmul.f32 0.03125, %v336_v21 }
  0xe8   : > { %v367_v24 = vsub.f32 %v1707_v0, %v351_v22 }
  0xe9   : > { %v375_v25 = vsub.f32 %v1710_v1, %v359_v23  ;;  %v322_v26 = vpop.xlane.xlu0 %321 }
  0xea   : > { %v338_v27 = vpop.xlane.xlu1 %337  ;;  %v352_v28 = vmul.f32 0.03125, %v322_v26  ;;  %v1777_v30 = vsel %vm318_vm0, %v367_v24, 0.0 }
  0xeb   : > { %v360_v29 = vmul.f32 0.03125, %v338_v27  ;;  %v1781_v31 = vsel %vm318_vm0, %v375_v25, 0.0  ;;  %v399_v32 = vmul.f32 %v1777_v30, %v1777_v30  ;;  %v1284_v25 = vld [vmem:[#allocation5 + $0x14] ss:$8 sps:$4 sm:$0xff]   ;;  %v1286_v27 = vld [vmem:[#allocation5 + $0x10] ss:$8 sps:$4 sm:$0xff]  }
  0xec   : > { %v368_v33 = vsub.f32 %v1715_v2, %v352_v28  ;;  %v407_v37 = vmul.f32 %v1781_v31, %v1781_v31  ;;  %679 = vmatprep.subr.bf16.mxu0 %v1284_v25  ;;  %1197 = vmatprep.subr.bf16.mxu1 %v1284_v25  ;;  %v1299_v25 = vld [vmem:[#allocation5 + $0x64] ss:$8 sps:$4 sm:$0xff]  }
  0xed   : > { %v376_v34 = vsub.f32 %v1718_v3, %v360_v29  ;;  %415 = vadd.xlane.f32.xlu0 %v399_v32  ;;  %v324_v35 = vpop.xlane.xlu0 %323  ;;  %680 = vmatpush1.bf16.msra.mxu0 %v1286_v27 }
  0xee   : > { %v326_v36 = vpop.xlane.xlu1 %325  ;;  %v353_v38 = vmul.f32 0.03125, %v324_v35  ;;  %v1791_v40 = vsel %vm318_vm0, %v368_v33, 0.0  ;;  %1205 = vmatpush1.bf16.msra.mxu1 %v1286_v27  ;;  %v1302_v27 = vld [vmem:[#allocation5 + $0x74] ss:$8 sps:$4 sm:$0xff]  }
  0xef   : > { %v354_v39 = vmul.f32 0.03125, %v326_v36  ;;  %v1795_v41 = vsel %vm318_vm0, %v376_v34, 0.0  ;;  %v400_v42 = vmul.f32 %v1791_v40, %v1791_v40 }
  0xf0   : > { %v369_v43 = vsub.f32 %v1721_v4, %v353_v38  ;;  %v408_v47 = vmul.f32 %v1795_v41, %v1795_v41 }
  0xf1   : > { %v370_v44 = vsub.f32 %v1726_v5, %v354_v39  ;;  %431 = vadd.xlane.f32.xlu0 %v407_v37  ;;  %417 = vadd.xlane.f32.xlu1 %v400_v42  ;;  %v340_v45 = vpop.xlane.xlu0 %339  ;;  %v1287_v42 = vld [vmem:[#allocation5 + $0x24] ss:$8 sps:$4 sm:$0xff]  }
  0xf2   : > { %v342_v46 = vpop.xlane.xlu1 %341  ;;  %v361_v48 = vmul.f32 0.03125, %v340_v45  ;;  %v1805_v50 = vsel %vm318_vm0, %v369_v43, 0.0  ;;  %v1289_v45 = vld [vmem:[#allocation5 + $0x20] ss:$8 sps:$4 sm:$0xff]   ;;  %681 = vmatprep.subr.bf16.mxu0 %v1287_v42  ;;  %1198 = vmatprep.subr.bf16.mxu1 %v1287_v42 }
  0xf3   : > { %v362_v49 = vmul.f32 0.03125, %v342_v46  ;;  %v1809_v51 = vsel %vm318_vm0, %v370_v44, 0.0  ;;  %v401_v52 = vmul.f32 %v1805_v50, %v1805_v50  ;;  %682 = vmatpush1.bf16.msra.mxu0 %v1289_v45  ;;  %1206 = vmatpush1.bf16.msra.mxu1 %v1289_v45 }
  0xf4   : > { %v377_v53 = vsub.f32 %v1729_v6, %v361_v48  ;;  %v402_v57 = vmul.f32 %v1809_v51, %v1809_v51 }
  0xf5   : > { %v378_v54 = vsub.f32 %v1734_v7, %v362_v49  ;;  %433 = vadd.xlane.f32.xlu1 %v408_v47  ;;  %419 = vadd.xlane.f32.xlu0 %v401_v52  ;;  %v328_v55 = vpop.xlane.xlu0 %327 }
  0xf6   : > { %v330_v56 = vpop.xlane.xlu1 %329  ;;  %v355_v58 = vmul.f32 0.03125, %v328_v55  ;;  %v1819_v60 = vsel %vm318_vm0, %v377_v53, 0.0 }
  0xf7   : > { %v356_v59 = vmul.f32 0.03125, %v330_v56  ;;  %v1823_v61 = vsel %vm318_vm0, %v378_v54, 0.0  ;;  %v409_v62 = vmul.f32 %v1819_v60, %v1819_v60  ;;  %v1290_v56 = vld [vmem:[#allocation5 + $0x34] ss:$8 sps:$4 sm:$0xff]  }
  0xf8   : > { %v371_v63 = vsub.f32 %v1739_v8, %v355_v58  ;;  %v410_v20 = vmul.f32 %v1823_v61, %v1823_v61  ;;  %683 = vmatprep.subr.bf16.mxu0 %v1290_v56  ;;  %1199 = vmatprep.subr.bf16.mxu1 %v1290_v56 }
  0xf9   : > { %v372_v16 = vsub.f32 %v1742_v9, %v356_v59  ;;  %421 = vadd.xlane.f32.xlu1 %v402_v57  ;;  %435 = vadd.xlane.f32.xlu0 %v409_v62  ;;  %v344_v17 = vpop.xlane.xlu0 %343  ;;  %v1292_v59 = vld [vmem:[#allocation5 + $0x30] ss:$8 sps:$4 sm:$0xff]  }
  0xfa   : > { %v346_v18 = vpop.xlane.xlu1 %345  ;;  %v363_v21 = vmul.f32 0.03125, %v344_v17  ;;  %v1833_v23 = vsel %vm318_vm0, %v371_v63, 0.0  ;;  %684 = vmatpush1.bf16.msra.mxu0 %v1292_v59  ;;  %1207 = vmatpush1.bf16.msra.mxu1 %v1292_v59 }
  0xfb   : > { %v364_v22 = vmul.f32 0.03125, %v346_v18  ;;  %v1837_v24 = vsel %vm318_vm0, %v372_v16, 0.0  ;;  %v403_v26 = vmul.f32 %v1833_v23, %v1833_v23  ;;  %v1293_v18 = vld [vmem:[#allocation5 + $0x44] ss:$8 sps:$4 sm:$0xff]  }
  0xfc   : > { %v379_v28 = vsub.f32 %v1747_v10, %v363_v21  ;;  %v404_v34 = vmul.f32 %v1837_v24, %v1837_v24  ;;  %685 = vmatprep.subr.bf16.mxu0 %v1293_v18  ;;  %1200 = vmatprep.subr.bf16.mxu1 %v1293_v18  ;;  %v1890_v18 = vld [vmem:[%s2104_s1] ss:$0 sm:$0xff] }
  0xfd   : > { %v380_v29 = vsub.f32 %v1750_v11, %v364_v22  ;;  %437 = vadd.xlane.f32.xlu1 %v410_v20  ;;  %423 = vadd.xlane.f32.xlu0 %v403_v26  ;;  %v332_v32 = vpop.xlane.xlu0 %331  ;;  %v1295_v20 = vld [vmem:[#allocation5 + $0x40] ss:$8 sps:$4 sm:$0xff]   ;;  %v1298_v22 = vld [vmem:[#allocation5 + $0x50] ss:$8 sps:$4 sm:$0xff]  }
  0xfe   : > { %v334_v33 = vpop.xlane.xlu1 %333  ;;  %v357_v35 = vmul.f32 0.03125, %v332_v32  ;;  %v1847_v37 = vsel %vm318_vm0, %v379_v28, 0.0  ;;  %686 = vmatpush1.bf16.msra.mxu0 %v1295_v20  ;;  %1208 = vmatpush1.bf16.msra.mxu1 %v1295_v20  ;;  %v1301_v26 = vld [vmem:[#allocation5 + $0x60] ss:$8 sps:$4 sm:$0xff]   ;;  %v1304_v28 = vld [vmem:[#allocation5 + $0x70] ss:$8 sps:$4 sm:$0xff]  }
  0xff   : > { %v358_v36 = vmul.f32 0.03125, %v334_v33  ;;  %v1851_v38 = vsel %vm318_vm0, %v380_v29, 0.0  ;;  %v411_v39 = vmul.f32 %v1847_v37, %v1847_v37  ;;  %687 = vmatprep.subr.bf16.mxu0 %v1296_v19  ;;  %1201 = vmatprep.subr.bf16.mxu1 %v1296_v19  ;;  %v1503_v29 = vmov 0  }
 0x100   : > { %v373_v43 = vsub.f32 %v1755_v12, %v357_v35  ;;  %v412_v48 = vmul.f32 %v1851_v38, %v1851_v38  ;;  %709 = vmatprep.mubr.bf16.mxu0 %v1503_v29  ;;  %749 = vmatprep.mubr.bf16.mxu1 %v1503_v29 }
 0x101   : > { %v374_v44 = vsub.f32 %v1758_v13, %v358_v36  ;;  %425 = vadd.xlane.f32.xlu1 %v404_v34  ;;  %439 = vadd.xlane.f32.xlu0 %v411_v39  ;;  %v348_v46 = vpop.xlane.xlu0 %347 }
 0x102   : > { %v350_v47 = vpop.xlane.xlu1 %349  ;;  %v365_v49 = vmul.f32 0.03125, %v348_v46  ;;  %v1861_v53 = vsel %vm318_vm0, %v373_v43, 0.0  ;;  %688 = vmatpush1.bf16.msra.mxu0 %v1298_v22  ;;  %1209 = vmatpush1.bf16.msra.mxu1 %v1298_v22 }
 0x103   : > { %v366_v52 = vmul.f32 0.03125, %v350_v47  ;;  %v1865_v54 = vsel %vm318_vm0, %v374_v44, 0.0  ;;  %v405_v55 = vmul.f32 %v1861_v53, %v1861_v53  ;;  %689 = vmatprep.subr.bf16.mxu0 %v1299_v25  ;;  %1202 = vmatprep.subr.bf16.mxu1 %v1299_v25 }
 0x104   : > { %v381_v57 = vsub.f32 %v1763_v14, %v365_v49  ;;  %v406_v62 = vmul.f32 %v1865_v54, %v1865_v54 }
 0x105   : > { %v382_v58 = vsub.f32 %v1766_v15, %v366_v52  ;;  %441 = vadd.xlane.f32.xlu1 %v412_v48  ;;  %427 = vadd.xlane.f32.xlu0 %v405_v55 }
 0x106   : > { %v1875_v63 = vsel %vm318_vm0, %v381_v57, 0.0  ;;  %690 = vmatpush1.bf16.msra.mxu0 %v1301_v26  ;;  %1210 = vmatpush1.bf16.msra.mxu1 %v1301_v26  ;;  %v1896_v26 = vld [vmem:[%s2105_s2] ss:$0 sm:$0xff] }
 0x107   : > { %v1879_v16 = vsel %vm318_vm0, %v382_v58, 0.0  ;;  %v413_v17 = vmul.f32 %v1875_v63, %v1875_v63  ;;  %691 = vmatprep.subr.bf16.mxu0 %v1302_v27  ;;  %1203 = vmatprep.subr.bf16.mxu1 %v1302_v27 }
 0x108   : > { %v414_v21 = vmul.f32 %v1879_v16, %v1879_v16 }
 0x109   : > { %429 = vadd.xlane.f32.xlu1 %v406_v62  ;;  %443 = vadd.xlane.f32.xlu0 %v413_v17 }
 0x10a   : > { %692 = vmatpush1.bf16.msra.mxu0 %v1304_v28  ;;  %1211 = vmatpush1.bf16.msra.mxu1 %v1304_v28 }
 0x10d   : > { %445 = vadd.xlane.f32.xlu1 %v414_v21 }
 0x17a   : > { %v416_v32 = vpop.xlane.xlu0 %415 }
 0x17b   : > { %v447_v33 = vmul.f32 0.03125, %v416_v32 }
 0x17d   : > { %v463_v34 = vadd.f32 1e-05, %v447_v33 }
 0x17e   : > { %v418_v35 = vpop.xlane.xlu1 %417  ;;  %v432_v36 = vpop.xlane.xlu0 %431 }
 0x17f   : > { %1305 = vrsqrt.f32 %v463_v34  ;;  %v448_v39 = vmul.f32 0.03125, %v418_v35  ;;  %v455_v42 = vmul.f32 0.03125, %v432_v36 }
 0x181   : > { %v464_v43 = vadd.f32 1e-05, %v448_v39  ;;  %v471_v44 = vadd.f32 1e-05, %v455_v42 }
 0x182   : > { %v434_v45 = vpop.xlane.xlu1 %433  ;;  %v420_v46 = vpop.xlane.xlu0 %419 }
 0x183   : > { %1307 = vrsqrt.f32 %v464_v43  ;;  %v456_v47 = vmul.f32 0.03125, %v434_v45  ;;  %v449_v48 = vmul.f32 0.03125, %v420_v46 }
 0x184   : > { %1309 = vrsqrt.f32 %v471_v44 }
 0x185   : > { %v472_v49 = vadd.f32 1e-05, %v456_v47  ;;  %v465_v52 = vadd.f32 1e-05, %v449_v48 }
 0x186   : > { %v422_v55 = vpop.xlane.xlu1 %421  ;;  %v436_v56 = vpop.xlane.xlu0 %435 }
 0x187   : > { %1311 = vrsqrt.f32 %v472_v49  ;;  %v450_v57 = vmul.f32 0.03125, %v422_v55  ;;  %v457_v58 = vmul.f32 0.03125, %v436_v56 }
 0x188   : > { %1313 = vrsqrt.f32 %v465_v52 }
 0x189   : > { %v1306_v59 = vpop.eup %1305  ;;  %v466_v62 = vadd.f32 1e-05, %v450_v57  ;;  %v473_v17 = vadd.f32 1e-05, %v457_v58 }
 0x18a   : > { %v438_v20 = vpop.xlane.xlu1 %437  ;;  %v424_v21 = vpop.xlane.xlu0 %423  ;;  %v495_v19 = vmul.f32 %v1306_v59, %v1777_v30 }
 0x18b   : > { %1315 = vrsqrt.f32 %v466_v62  ;;  %v458_v22 = vmul.f32 0.03125, %v438_v20  ;;  %v451_v25 = vmul.f32 0.03125, %v424_v21 }
 0x18c   : > { %1317 = vrsqrt.f32 %v473_v17  ;;  %v518_v27 = vmul.f32 %v1890_v18, %v495_v19 }
 0x18d   : > { %v1308_v28 = vpop.eup %1307  ;;  %v474_v32 = vadd.f32 1e-05, %v458_v22  ;;  %v467_v33 = vadd.f32 1e-05, %v451_v25 }
 0x18e   : > { %v1310_v34 = vpop.eup %1309  ;;  %v426_v35 = vpop.xlane.xlu1 %425  ;;  %v496_v39 = vmul.f32 %v1308_v28, %v1791_v40  ;;  %v541_v30 = vadd.f32 %v1896_v26, %v518_v27 }
 0x18f   : > { %v440_v36 = vpop.xlane.xlu0 %439  ;;  %1319 = vrsqrt.f32 %v474_v32  ;;  %v452_v42 = vmul.f32 0.03125, %v426_v35  ;;  %v503_v44 = vmul.f32 %v1310_v34, %v1781_v31 }
 0x190   : > { %v459_v43 = vmul.f32 0.03125, %v440_v36  ;;  %1321 = vrsqrt.f32 %v467_v33  ;;  %v519_v45 = vmul.f32 %v1890_v18, %v496_v39  ;;  %v557_v57 = vmax.f32 %v541_v30, 0.0 }
 0x191   : > { %v1312_v46 = vpop.eup %1311  ;;  %v468_v47 = vadd.f32 1e-05, %v452_v42  ;;  %v526_v49 = vmul.f32 %v1890_v18, %v503_v44 }
 0x192   : > { %v475_v48 = vadd.f32 1e-05, %v459_v43  ;;  %v1314_v52 = vpop.eup %1313  ;;  %v442_v55 = vpop.xlane.xlu1 %441  ;;  %v542_v40 = vadd.f32 %v1896_v26, %v519_v45  ;;  %v504_v58 = vmul.f32 %v1312_v46, %v1795_v41 }
 0x193   : > { %v428_v56 = vpop.xlane.xlu0 %427  ;;  %1323 = vrsqrt.f32 %v468_v47  ;;  %v460_v59 = vmul.f32 0.03125, %v442_v55  ;;  %v549_v31 = vadd.f32 %v1896_v26, %v526_v49  ;;  %v497_v21 = vmul.f32 %v1314_v52, %v1805_v50 }
 0x194   : > { %v453_v62 = vmul.f32 0.03125, %v428_v56  ;;  %1325 = vrsqrt.f32 %v475_v48  ;;  %v558_v17 = vmax.f32 %v542_v40, 0.0  ;;  %v527_v20 = vmul.f32 %v1890_v18, %v504_v58 }
 0x195   : > { %v1316_v19 = vpop.eup %1315  ;;  %v476_v22 = vadd.f32 1e-05, %v460_v59  ;;  %v565_v27 = vmax.f32 %v549_v31, 0.0  ;;  %v520_v36 = vmul.f32 %v1890_v18, %v497_v21 }
 0x196   : > { %v469_v25 = vadd.f32 1e-05, %v453_v62  ;;  %v1318_v28 = vpop.eup %1317  ;;  %v430_v32 = vpop.xlane.xlu1 %429  ;;  %v573_v34 = vpack.c.bf16 %v558_v17, %v557_v57  ;;  %v550_v41 = vadd.f32 %v1896_v26, %v527_v20  ;;  %v498_v35 = vmul.f32 %v1316_v19, %v1809_v51 }
 0x197   : > { %v444_v33 = vpop.xlane.xlu0 %443  ;;  %1327 = vrsqrt.f32 %v476_v22  ;;  %v454_v39 = vmul.f32 0.03125, %v430_v32  ;;  %v505_v42 = vmul.f32 %v1318_v28, %v1819_v60  ;;  %v543_v44 = vadd.f32 %v1896_v26, %v520_v36 }
 0x198   : > { %v461_v30 = vmul.f32 0.03125, %v444_v33  ;;  %1329 = vrsqrt.f32 %v469_v25  ;;  %710 = vmatmul.mubr.bf16.vlgmr.msra.gmra.mrb[0].mxu0 %v573_v34  ;;  %v566_v50 = vmax.f32 %v550_v41, 0.0  ;;  %v521_v43 = vmul.f32 %v1890_v18, %v498_v35 }
 0x199   : > { %v1320_v45 = vpop.eup %1319  ;;  %v470_v46 = vadd.f32 1e-05, %v454_v39  ;;  %719 = vmatprep.mubr.bf16.mxu0 %v1503_v29  ;;  %v528_v51 = vmul.f32 %v1890_v18, %v505_v42  ;;  %v559_v40 = vmax.f32 %v543_v44, 0.0 }
 0x19a   : > { %v477_v47 = vadd.f32 1e-05, %v461_v30  ;;  %v1322_v48 = vpop.eup %1321  ;;  %v446_v49 = vpop.xlane.xlu1 %445  ;;  %v577_v52 = vpack.c.bf16 %v566_v50, %v565_v27  ;;  %v544_v55 = vadd.f32 %v1896_v26, %v521_v43  ;;  %v506_v60 = vmul.f32 %v1320_v45, %v1823_v61 }
 0x19b   : > { %1331 = vrsqrt.f32 %v470_v46  ;;  %v462_v56 = vmul.f32 0.03125, %v446_v49  ;;  %v499_v57 = vmul.f32 %v1322_v48, %v1833_v23  ;;  %v551_v62 = vadd.f32 %v1896_v26, %v528_v51 }
 0x19c   : > { %1333 = vrsqrt.f32 %v477_v47  ;;  %750 = vmatmul.mubr.bf16.vlgmr.msra.gmra.mrb[0].mxu1 %v577_v52  ;;  %v560_v58 = vmax.f32 %v544_v55, 0.0  ;;  %v529_v59 = vmul.f32 %v1890_v18, %v506_v60 }
 0x19d   : > { %v1324_v31 = vpop.eup %1323  ;;  %v478_v17 = vadd.f32 1e-05, %v462_v56  ;;  %759 = vmatprep.mubr.bf16.mxu1 %v1503_v29  ;;  %v522_v20 = vmul.f32 %v1890_v18, %v499_v57  ;;  %v567_v25 = vmax.f32 %v551_v62, 0.0 }
 0x19e   : > { %v1326_v21 = vpop.eup %1325  ;;  %v574_v61 = vpack.c.bf16 %v560_v58, %v559_v40  ;;  %v552_v19 = vadd.f32 %v1896_v26, %v529_v59  ;;  %v500_v22 = vmul.f32 %v1324_v31, %v1837_v24 }
 0x19f   : > { %1335 = vrsqrt.f32 %v478_v17  ;;  %v507_v23 = vmul.f32 %v1326_v21, %v1847_v37  ;;  %v545_v32 = vadd.f32 %v1896_v26, %v522_v20 }
 0x1a0   : > { %720 = vmatmul.mubr.bf16.gmra.mrb[4].mxu0 %v574_v61  ;;  %v568_v27 = vmax.f32 %v552_v19, 0.0  ;;  %v523_v28 = vmul.f32 %v1890_v18, %v500_v22 }
 0x1a1   : > { %v1328_v33 = vpop.eup %1327  ;;  %729 = vmatprep.mubr.bf16.mxu0 %v1503_v29  ;;  %v530_v34 = vmul.f32 %v1890_v18, %v507_v23  ;;  %v561_v39 = vmax.f32 %v545_v32, 0.0 }
 0x1a2   : > { %v1330_v41 = vpop.eup %1329  ;;  %v578_v35 = vpack.c.bf16 %v568_v27, %v567_v25  ;;  %v546_v36 = vadd.f32 %v1896_v26, %v523_v28  ;;  %v508_v24 = vmul.f32 %v1328_v33, %v1851_v38 }
 0x1a3   : > { %v501_v37 = vmul.f32 %v1330_v41, %v1861_v53  ;;  %v553_v50 = vadd.f32 %v1896_v26, %v530_v34 }
 0x1a4   : > { %760 = vmatmul.mubr.bf16.gmra.mrb[4].mxu1 %v578_v35  ;;  %v562_v30 = vmax.f32 %v546_v36, 0.0  ;;  %v531_v42 = vmul.f32 %v1890_v18, %v508_v24 }
 0x1a5   : > { %v1332_v43 = vpop.eup %1331  ;;  %769 = vmatprep.mubr.bf16.mxu1 %v1503_v29  ;;  %v524_v44 = vmul.f32 %v1890_v18, %v501_v37  ;;  %v569_v51 = vmax.f32 %v553_v50, 0.0 }
 0x1a6   : > { %v1334_v45 = vpop.eup %1333  ;;  %v575_v46 = vpack.c.bf16 %v562_v30, %v561_v39  ;;  %v554_v47 = vadd.f32 %v1896_v26, %v531_v42  ;;  %v502_v38 = vmul.f32 %v1332_v43, %v1865_v54 }
 0x1a7   : > { %v509_v53 = vmul.f32 %v1334_v45, %v1875_v63  ;;  %v547_v52 = vadd.f32 %v1896_v26, %v524_v44 }
 0x1a8   : > { %730 = vmatmul.mubr.bf16.gmra.mrb[8].mxu0 %v575_v46  ;;  %v570_v48 = vmax.f32 %v554_v47, 0.0  ;;  %v525_v49 = vmul.f32 %v1890_v18, %v502_v38 }
 0x1a9   : > { %v1336_v55 = vpop.eup %1335  ;;  %739 = vmatprep.mubr.bf16.mxu0 %v1503_v29  ;;  %v532_v60 = vmul.f32 %v1890_v18, %v509_v53  ;;  %v563_v63 = vmax.f32 %v547_v52, 0.0 }
 0x1aa   : > { %v579_v56 = vpack.c.bf16 %v570_v48, %v569_v51  ;;  %v548_v40 = vadd.f32 %v1896_v26, %v525_v49  ;;  %v510_v54 = vmul.f32 %v1336_v55, %v1879_v16 }
 0x1ab   : > { %v555_v59 = vadd.f32 %v1896_v26, %v532_v60 }
 0x1ac   : > { %770 = vmatmul.mubr.bf16.gmra.mrb[8].mxu1 %v579_v56  ;;  %v564_v57 = vmax.f32 %v548_v40, 0.0  ;;  %v533_v58 = vmul.f32 %v1890_v18, %v510_v54  ;;  %v1955_v18 = vld [vmem:[%s2107_s4] ss:$0 sm:$0xff] }
 0x1ad   : > { %779 = vmatprep.mubr.bf16.mxu1 %v1503_v29  ;;  %v571_v17 = vmax.f32 %v555_v59, 0.0 }
 0x1ae   : > { %v576_v62 = vpack.c.bf16 %v564_v57, %v563_v63  ;;  %v556_v31 = vadd.f32 %v1896_v26, %v533_v58 }
 0x1b0   : > { %740 = vmatmul.mubr.bf16.gmra.mrb[12].mxu0 %v576_v62  ;;  %v572_v20 = vmax.f32 %v556_v31, 0.0 }
 0x1b2   : > { %v580_v21 = vpack.c.bf16 %v572_v20, %v571_v17 }
 0x1b4   : > { %780 = vmatmul.mubr.bf16.gmra.mrb[12].mxu1 %v580_v21 }
 0x26b   : > { %v711_v16 = vpop.f32.mrb[0].mxu0 }
 0x26c   : > { %v713_v61 = vpop.f32.mrb[1].mxu0 }
 0x26d   : > { %v870_v19 = vadd.f32 %v713_v61, %v1707_v0  ;;  %v715_v29 = vpop.f32.mrb[2].mxu0 }
 0x26e   : > { %v1152_v22 = vpack.c.bf16 %v715_v29, %v711_v16  ;;  %v717_v23 = vpop.f32.mrb[3].mxu0 }
 0x26f   : > { %v893_v26 = vadd.f32 %v1955_v18, %v870_v19  ;;  %v871_v25 = vadd.f32 %v717_v23, %v1715_v2  ;;  %v751_v27 = vpop.f32.mrb[0].mxu1 }
 0x270   : > { %1153 = vst [vmem:[%s1960_s8] sm:$0xff] %v1152_v22   ;;  %v753_v28 = vpop.f32.mrb[1].mxu1 }
 0x271   : > { %909 = vst [vmem:[%s1965_s15] sm:$0xff] %v893_v26  ;;  %v894_v0 = vadd.f32 %v1955_v18, %v871_v25  ;;  %v878_v32 = vadd.f32 %v753_v28, %v1710_v1  ;;  %v755_v2 = vpop.f32.mrb[2].mxu1 }
 0x272   : > { %v1172_v33 = vpack.c.bf16 %v755_v2, %v751_v27  ;;  %v757_v34 = vpop.f32.mrb[3].mxu1 }
 0x273   : > { %910 = vst [vmem:[%s1965_s15 + $0x8] sm:$0xff] %v894_v0  ;;  %v901_v41 = vadd.f32 %v1955_v18, %v878_v32  ;;  %v879_v35 = vadd.f32 %v757_v34, %v1718_v3  ;;  %v721_v36 = vpop.f32.mrb[4].mxu0 }
 0x274   : > { %1192 = vst [vmem:[%s1960_s8 + $0x20] sm:$0xff] %v1172_v33   ;;  %v723_v24 = vpop.f32.mrb[5].mxu0 }
 0x275   : > { %917 = vst [vmem:[%s1965_s15 + $0x40] sm:$0xff] %v901_v41  ;;  %v902_v37 = vadd.f32 %v1955_v18, %v879_v35  ;;  %v872_v39 = vadd.f32 %v723_v24, %v1721_v4  ;;  %v725_v1 = vpop.f32.mrb[6].mxu0 }
 0x276   : > { %v1157_v30 = vpack.c.bf16 %v725_v1, %v721_v36  ;;  %v727_v42 = vpop.f32.mrb[7].mxu0 }
 0x277   : > { %918 = vst [vmem:[%s1965_s15 + $0x48] sm:$0xff] %v902_v37  ;;  %v895_v50 = vadd.f32 %v1955_v18, %v872_v39  ;;  %v873_v43 = vadd.f32 %v727_v42, %v1726_v5  ;;  %v761_v3 = vpop.f32.mrb[4].mxu1 }
 0x278   : > { %1189 = vst [vmem:[%s1960_s8 + $0x8] sm:$0xff] %v1157_v30   ;;  %v763_v44 = vpop.f32.mrb[5].mxu1 }
 0x279   : > { %911 = vst [vmem:[%s1965_s15 + $0x10] sm:$0xff] %v895_v50  ;;  %v896_v45 = vadd.f32 %v1955_v18, %v873_v43  ;;  %v880_v46 = vadd.f32 %v763_v44, %v1729_v6  ;;  %v765_v4 = vpop.f32.mrb[6].mxu1 }
 0x27a   : > { %v1177_v47 = vpack.c.bf16 %v765_v4, %v761_v3  ;;  %v767_v38 = vpop.f32.mrb[7].mxu1 }
 0x27b   : > { %912 = vst [vmem:[%s1965_s15 + $0x18] sm:$0xff] %v896_v45  ;;  %v903_v53 = vadd.f32 %v1955_v18, %v880_v46  ;;  %v881_v51 = vadd.f32 %v767_v38, %v1734_v7  ;;  %v731_v5 = vpop.f32.mrb[8].mxu0 }
 0x27c   : > { %1193 = vst [vmem:[%s1960_s8 + $0x28] sm:$0xff] %v1177_v47   ;;  %v733_v48 = vpop.f32.mrb[9].mxu0 }
 0x27d   : > { %919 = vst [vmem:[%s1965_s15 + $0x50] sm:$0xff] %v903_v53  ;;  %v904_v49 = vadd.f32 %v1955_v18, %v881_v51  ;;  %v874_v52 = vadd.f32 %v733_v48, %v1739_v8  ;;  %v735_v6 = vpop.f32.mrb[10].mxu0 }
 0x27e   : > { %v1162_v55 = vpack.c.bf16 %v735_v6, %v731_v5  ;;  %v737_v60 = vpop.f32.mrb[11].mxu0 }
 0x27f   : > { %920 = vst [vmem:[%s1965_s15 + $0x58] sm:$0xff] %v904_v49  ;;  %v897_v56 = vadd.f32 %v1955_v18, %v874_v52  ;;  %v875_v7 = vadd.f32 %v737_v60, %v1742_v9  ;;  %v771_v40 = vpop.f32.mrb[8].mxu1 }
 0x280   : > { %1190 = vst [vmem:[%s1960_s8 + $0x10] sm:$0xff] %v1162_v55   ;;  %v773_v54 = vpop.f32.mrb[9].mxu1 }
 0x281   : > { %913 = vst [vmem:[%s1965_s15 + $0x20] sm:$0xff] %v897_v56  ;;  %v898_v63 = vadd.f32 %v1955_v18, %v875_v7  ;;  %v882_v8 = vadd.f32 %v773_v54, %v1747_v10  ;;  %v775_v57 = vpop.f32.mrb[10].mxu1 }
 0x282   : > { %v1182_v58 = vpack.c.bf16 %v775_v57, %v771_v40  ;;  %v777_v59 = vpop.f32.mrb[11].mxu1 }
 0x283   : > { %914 = vst [vmem:[%s1965_s15 + $0x28] sm:$0xff] %v898_v63  ;;  %v905_v62 = vadd.f32 %v1955_v18, %v882_v8  ;;  %v883_v31 = vadd.f32 %v777_v59, %v1750_v11  ;;  %v741_v9 = vpop.f32.mrb[12].mxu0 }
 0x284   : > { %1194 = vst [vmem:[%s1960_s8 + $0x30] sm:$0xff] %v1182_v58   ;;  %v743_v17 = vpop.f32.mrb[13].mxu0 }
 0x285   : > { %921 = vst [vmem:[%s1965_s15 + $0x60] sm:$0xff] %v905_v62  ;;  %v906_v10 = vadd.f32 %v1955_v18, %v883_v31  ;;  %v876_v20 = vadd.f32 %v743_v17, %v1755_v12  ;;  %v745_v21 = vpop.f32.mrb[14].mxu0 }
 0x286   : > { %v1167_v16 = vpack.c.bf16 %v745_v21, %v741_v9  ;;  %v747_v61 = vpop.f32.mrb[15].mxu0 }
 0x287   : > { %922 = vst [vmem:[%s1965_s15 + $0x68] sm:$0xff] %v906_v10  ;;  %v899_v11 = vadd.f32 %v1955_v18, %v876_v20  ;;  %v877_v19 = vadd.f32 %v747_v61, %v1758_v13  ;;  %v781_v29 = vpop.f32.mrb[12].mxu1 }
 0x288   : > { %1191 = vst [vmem:[%s1960_s8 + $0x18] sm:$0xff] %v1167_v16   ;;  %v783_v22 = vpop.f32.mrb[13].mxu1 }
 0x289   : > { %915 = vst [vmem:[%s1965_s15 + $0x30] sm:$0xff] %v899_v11  ;;  %v900_v12 = vadd.f32 %v1955_v18, %v877_v19  ;;  %v884_v23 = vadd.f32 %v783_v22, %v1763_v14  ;;  %v785_v26 = vpop.f32.mrb[14].mxu1 }
 0x28a   : > { %v1187_v13 = vpack.c.bf16 %v785_v26, %v781_v29  ;;  %v787_v25 = vpop.f32.mrb[15].mxu1 }
 0x28b   : > { %916 = vst [vmem:[%s1965_s15 + $0x38] sm:$0xff] %v900_v12  ;;  %v907_v27 = vadd.f32 %v1955_v18, %v884_v23  ;;  %v885_v28 = vadd.f32 %v787_v25, %v1766_v15 }
 0x28c   : > { %1195 = vst [vmem:[%s1960_s8 + $0x38] sm:$0xff] %v1187_v13  }
 0x28d   : > { %923 = vst [vmem:[%s1965_s15 + $0x70] sm:$0xff] %v907_v27  ;;  %v908_v14 = vadd.f32 %v1955_v18, %v885_v28 }
 0x28e   : > { %1408 = shalt.err (!%p1405_p7)
}
 0x28f   : > { %s1409_s8 = scalar_lea.hbm %s2021_s29, 1024  ;;  %s1413_s25 = scalar_lea.hbm %s2108_s5, 2048 }
 0x290   : > { %p1410_p9 = scmp.ne.s32.totalorder %s2021_s29, %s1409_s8  ;;  %p1414_p5 = scmp.lt.u32.totalorder %s2021_s29, %s2108_s5 }
 0x291   : > { %p1415_p11 = scmp.lt.u32.totalorder %s1413_s25, %s1409_s8  ;;  %p1417_p4 = scmp.lt.u32.totalorder %s1409_s8, %s2021_s29 }
 0x292   : > { %p1411_p1 = pnand %p1410_p9, %p1639_p12 }
 0x293   : > { %p1416_p2 = por %p1415_p11, %p1414_p5 }
 0x294   : > { %p1412_p0 = pneg %p1411_p1 }
 0x295   : > { %p1418_p6 = por %p1417_p4, %p1416_p2 }
 0x297   : > { %p1419_p8 = pnand %p1418_p6, %p1412_p0 }
 0x299   : > { %1422 = shalt.err (!%p1419_p8)
}
 0x29a   : > { %s1505_s10 = smov 64   ;;  %s1506_s18 = smov 4   ;;  %924 = vst [vmem:[%s1965_s15 + $0x78] sm:$0xff] %v908_v14 }
 0x29b   : > { %1218 = dma.vmem_to_hbm [thread:$0]  (%p1639_p12), %s2007_s16, 1024, %s2021_s29, %s926_s19, %s1505_s10, %s1505_s10, %s1506_s18  }
 0x29c   : > { %s931_s11 = scalar_lea.sflag [#allocation9], %s1690_s12  ;;  %s1423_s8 = scalar_lea.vmem %s2031_s7, 2048 }
 0x29d   : > { %p1424_p10 = scmp.ne.s32.totalorder %s2031_s7, %s1423_s8  ;;  %s1507_s17 = smov [#allocation8]  }
 0x29e   : > { %s1427_s27 = sshll.u32 %s1507_s17, 4  ;;  %s1428_s27 = int_to_ptr.vmem [resolvable:$false] %s1427_s27 }
 0x29f   : > { %p1425_p13 = pnand %p1424_p10, %p1639_p12  ;;  %s1429_s25 = scalar_lea.vmem %s1428_s27, 4096 }
 0x2a0   : > { %p1430_p7 = scmp.lt.s32.totalorder %s2031_s7, %s1428_s27  ;;  %p1431_p9 = scmp.lt.s32.totalorder %s1429_s25, %s1423_s8 }
 0x2a1   : > { %p1426_p3 = pneg %p1425_p13 }
 0x2a2   : > { %p1432_p1 = por %p1431_p9, %p1430_p7 }
 0x2a4   : > { %p1433_p0 = pnand %p1432_p1, %p1426_p3 }
 0x2a6   : > { %1436 = shalt.err (!%p1433_p0)
}
 0x2a7   : > { %s1437_s15 = scalar_lea.hbm %s2029_s26, 2048  ;;  %s1441_s19 = scalar_lea.hbm %s2109_s6, 4096 }
 0x2a8   : > { %p1438_p5 = scmp.ne.s32.totalorder %s2029_s26, %s1437_s15  ;;  %p1442_p4 = scmp.lt.u32.totalorder %s2029_s26, %s2109_s6 }
 0x2a9   : > { %p1443_p6 = scmp.lt.u32.totalorder %s1441_s19, %s1437_s15  ;;  %p1445_p10 = scmp.lt.u32.totalorder %s1437_s15, %s2029_s26 }
 0x2aa   : > { %p1439_p11 = pnand %p1438_p5, %p1639_p12 }
 0x2ab   : > { %p1444_p8 = por %p1443_p6, %p1442_p4 }
 0x2ac   : > { %p1440_p2 = pneg %p1439_p11 }
 0x2ad   : > { %p1446_p13 = por %p1445_p10, %p1444_p8 }
 0x2af   : > { %p1447_p3 = pnand %p1446_p13, %p1440_p2 }
 0x2b1   : > { %1450 = shalt.err (!%p1447_p3)
}
 0x2b2   : > { %s1508_s10 = smov 128   ;;  %s1509_s18 = smov 8  }
 0x2b3   : > { %1219 = dma.vmem_to_hbm [thread:$0]  (%p1639_p12), %s2031_s7, 2048, %s2029_s26, %s931_s11, %s1508_s10, %s1508_s10, %s1509_s18  }
 0x2b4 PF: > { %s975_s8 = sand.u32 1, %s1485_s21   ;;  %p2124_p7 = scmp.ne.s32.totalorder %s2114_s28, 0 }
 0x2b5   : > { %p2125_p9 = scmp.ge.s32.totalorder %s1497_s24, 2  ;;  %s976_s17 = scalar_lea.sflag [#allocation4], %s975_s8 }
 0x2b7   : > { %p1231_p1 = pnand %p2125_p9, %p2124_p7 }
 0x2b9   : > { %1476 = dma.done.wait (!%p1231_p1), %s976_s17, 1024  }
 0x2ba   : > { %1478 = vsyncadd (!%p1231_p1), %s976_s17, 4294966272  ;;  %s985_s27 = scalar_lea.sflag [#allocation9], %s975_s8 }
 0x2bb   : > { %1480 = dma.done.wait (!%p1231_p1), %s985_s27, 2048  }
 0x2bc   : > { %1482 = vsyncadd (!%p1231_p1), %s985_s27, 4294965248  ;;  %p24_p12 = scmp.ge.s32.totalorder %s1601_s9, 4   ;;  %s2126_s21 = smov %s1489_s22 }
 0x2bd   : > { %s2127_s22 = smov %s1493_s23  ;;  %s2128_s23 = smov %s1635_s13 }
 0x2be   : > { %s2129_s24 = smov %s1601_s9  ;;  %26 = sbr.rel (!%p24_p12) target bundleno = 8 (0x8), region = 106 }
 0x2c5   :  { %990 = vsyncpa [#allocation3], 1 }
 0x2c6   :  { %992 = vsyncpa [#allocation3 + $0x1], 1 }
 0x2c7   :  { %993 = vsyncpa [#allocation6], 1 }
 0x2c8   :  { %994 = vsyncpa [#allocation4], 1 }
 0x2c9   :  { %996 = vsyncpa [#allocation4 + $0x1], 1 }
 0x2ca   :  { %997 = vsyncpa [#allocation9], 1 }
 0x2cb   :  { %999 = vsyncpa [#allocation9 + $0x1], 1 }

</bundles_post_ra>
